<compile_context>
chip_gen: v6e
topology: v6e:2x2x1
jax: 0.10.0
libtpu: 0.0.40
codegen_flags: <defaults>
</compile_context>

<pallas_src>
import jax
import jax.numpy as jnp
from jax.experimental import pallas as pl
from jax.experimental.pallas import tpu as pltpu


def headnet_kernel(x_ref, w1_ref, b1_ref, w2_ref, b2_ref, o_ref):
    # x_ref: (M_pad, D); weights fully resident in VMEM.
    x = x_ref[...]                                                # (M, D)
    h = jnp.dot(x, w1_ref[...], preferred_element_type=jnp.float32)
    h = jnp.maximum(h + b1_ref[...], 0.0)                         # (M, 128) ReLU
    y = jnp.dot(h, w2_ref[...], preferred_element_type=jnp.float32)
    o_ref[...] = (y + b2_ref[...]).astype(o_ref.dtype)            # (M, NC_pad)


def _headnet_forward_impl(x_stacked, w1, b1, w2, b2):
    """x_stacked: (L, B, D). Returns stacked predictions (L, B, num_classes)."""
    L, B, D = x_stacked.shape
    NC = w2.shape[1]

    # Lane-dense output: pad the final projection to a multiple of 128 lanes.
    NC_pad = max(128, ((NC + 127) // 128) * 128)
    w2p = jnp.pad(w2, ((0, 0), (0, NC_pad - NC)))
    b2p = jnp.pad(b2, ((0, 0), (0, NC_pad - NC)))

    # One MXU slab: M = L*B, padded to a sublane multiple (8).
    M = L * B
    M_pad = ((M + 7) // 8) * 8
    x2 = x_stacked.reshape(M, D)
    if M_pad != M:
        x2 = jnp.pad(x2, ((0, M_pad - M), (0, 0)))

    # Single invocation (no grid): all operands are whole-array VMEM blocks.
    # TODO(synk): if D or L*B ever scale to tens of thousands, tile the M and
    # K axes with a grid (v7x has only 64 MiB VMEM) instead of keeping the
    # whole slab resident.
    vmem = pl.BlockSpec(memory_space=pltpu.MemorySpace.VMEM)
    out = pl.pallas_call(
        headnet_kernel,
        out_shape=jax.ShapeDtypeStruct((M_pad, NC_pad), jnp.float32),
        in_specs=[vmem, vmem, vmem, vmem, vmem],
        out_specs=vmem,
    )(x2, w1, b1, w2p, b2p)

    return out[:M, :NC].reshape(L, B, NC)


headnet_forward = jax.jit(_headnet_forward_impl)


if __name__ == "__main__":
    # Small deterministic setup consistent with the module:
    #   output_dim (D) = 32, hidden = 128, num_classes = 10, batch = 8, L = 3.
    D, H, NC = 32, 128, 10
    B, L = 8, 3

    key = jax.random.PRNGKey(0)
    k_feats, k_w1, k_b1, k_w2, k_b2 = jax.random.split(key, 5)

    features = [
        jax.random.normal(k, (B, D), dtype=jnp.float32)
        for k in jax.random.split(k_feats, L)
    ]
    x_stacked = jnp.stack(features, axis=0)                       # (L, B, D)

    # Deterministic parameter init; shapes per nn.Linear(D,128), nn.Linear(128,NC)
    # stored as (in, out) == torch weight transposed.
    w1 = jax.random.normal(k_w1, (D, H), dtype=jnp.float32) * 0.05
    b1 = jax.random.normal(k_b1, (1, H), dtype=jnp.float32) * 0.05
    w2 = jax.random.normal(k_w2, (H, NC), dtype=jnp.float32) * 0.05
    b2 = jax.random.normal(k_b2, (1, NC), dtype=jnp.float32) * 0.05

    preds = headnet_forward(x_stacked, w1, b1, w2, b2)
    preds = jax.block_until_ready(preds)                          # (L, B, NC)

    # Pure-JAX reference of the forward semantics (per-feature head).
    def ref_head(x):
        h = jnp.maximum(x @ w1 + b1, 0.0)
        return h @ w2 + b2

    ok = preds.shape == (L, B, NC)
    for i in range(L):
        r = ref_head(features[i])
        ok = ok and bool(jnp.allclose(preds[i], r, atol=1e-5, rtol=1e-5))

    if ok:
        print("KERNEL_OK")
</pallas_src>

<mosaic_0001>
module attributes {stable_mosaic.version = 11 : i64} {
  func.func @headnet_kernel(%arg0: memref<24x32xf32, #tpu.memory_space<vmem>>, %arg1: memref<32x128xf32, #tpu.memory_space<vmem>>, %arg2: memref<1x128xf32, #tpu.memory_space<vmem>>, %arg3: memref<128x128xf32, #tpu.memory_space<vmem>>, %arg4: memref<1x128xf32, #tpu.memory_space<vmem>>, %arg5: memref<24x128xf32, #tpu.memory_space<vmem>>) attributes {dimension_semantics = [], scalar_prefetch = 0 : i64, scratch_operands = 0 : i64, tpu.core_type = #tpu.core_type<tc>} {
    %c0 = arith.constant 0 : index
    %c0_0 = arith.constant 0 : index
    %0 = vector.load %arg0[%c0, %c0_0] : memref<24x32xf32, #tpu.memory_space<vmem>>, vector<24x32xf32>
    %c0_1 = arith.constant 0 : index
    %c0_2 = arith.constant 0 : index
    %1 = vector.load %arg1[%c0_1, %c0_2] : memref<32x128xf32, #tpu.memory_space<vmem>>, vector<32x128xf32>
    %cst = arith.constant dense<0.000000e+00> : vector<24x128xf32>
    %2 = tpu.matmul %0, %1, %cst {dimension_numbers = #tpu.dot_dimension_numbers<[1], [0], [0], [1], [0, 0, 1, 1], [], []>} : vector<24x32xf32>, vector<32x128xf32>, vector<24x128xf32> -> vector<24x128xf32>
    %c0_3 = arith.constant 0 : index
    %c0_4 = arith.constant 0 : index
    %3 = vector.load %arg2[%c0_3, %c0_4] : memref<1x128xf32, #tpu.memory_space<vmem>>, vector<1x128xf32>
    %4 = vector.broadcast %3 : vector<1x128xf32> to vector<24x128xf32>
    %5 = arith.addf %2, %4 : vector<24x128xf32>
    %cst_5 = arith.constant 0.000000e+00 : f32
    %6 = vector.broadcast %cst_5 : f32 to vector<24x128xf32>
    %7 = arith.maximumf %5, %6 : vector<24x128xf32>
    %c0_6 = arith.constant 0 : index
    %c0_7 = arith.constant 0 : index
    %8 = vector.load %arg3[%c0_6, %c0_7] : memref<128x128xf32, #tpu.memory_space<vmem>>, vector<128x128xf32>
    %cst_8 = arith.constant dense<0.000000e+00> : vector<24x128xf32>
    %9 = tpu.matmul %7, %8, %cst_8 {dimension_numbers = #tpu.dot_dimension_numbers<[1], [0], [0], [1], [0, 0, 1, 1], [], []>} : vector<24x128xf32>, vector<128x128xf32>, vector<24x128xf32> -> vector<24x128xf32>
    %c0_9 = arith.constant 0 : index
    %c0_10 = arith.constant 0 : index
    %10 = vector.load %arg4[%c0_9, %c0_10] : memref<1x128xf32, #tpu.memory_space<vmem>>, vector<1x128xf32>
    %11 = vector.broadcast %10 : vector<1x128xf32> to vector<24x128xf32>
    %12 = arith.addf %9, %11 : vector<24x128xf32>
    %c0_11 = arith.constant 0 : index
    %c0_12 = arith.constant 0 : index
    %13 = vector.load %arg5[%c0_11, %c0_12] : memref<24x128xf32, #tpu.memory_space<vmem>>, vector<24x128xf32>
    tpu.vector_store %arg5[%c0_11, %c0_12], %12 {strides = array<i32>} : memref<24x128xf32, #tpu.memory_space<vmem>>, vector<24x128xf32>,
    return
  }
}

</mosaic_0001>

<bundles_post_ra>
// kernel: _headnet_forward_impl.1
= control target key start
LH: loop header
LB: loop body
LE: loop exit
PB: predicated region body
PF: predicated region fallthrough
CT: control target
= control target key end

     0   :  { %v328_v0 = vmov 0.0   ;;  %vm329_vm0 = vmmov 0   ;;  %vm34_vm1 = vcmask 261120   ;;  %s479_s1 = inlined_call_operand.vmem [shape: f32[32,128], index: 1, kind: input, shape index: {}]   ;;  %s480_s3 = inlined_call_operand.vmem [shape: f32[128,128], index: 3, kind: input, shape index: {}]   ;;  %s481_s0 = inlined_call_operand.vmem [shape: f32[24,32], index: 0, kind: input, shape index: {}]   ;;  %s482_s2 = inlined_call_operand.vmem [shape: f32[1,128], index: 2, kind: input, shape index: {}]   ;;  %s483_s4 = inlined_call_operand.vmem [shape: f32[1,128], index: 4, kind: input, shape index: {}]   ;;  %s484_s5 = inlined_call_operand.vmem [shape: f32[24,128], index: 5, kind: output, shape index: {}]  }
   0x1   :  { %268 = vmatprep.subr.mxu0 %v328_v0  ;;  %v26_v1 = vld [vmem:[%s479_s1 + $0x18] sm:$0xff]  ;;  %v25_v2 = vld [vmem:[%s479_s1 + $0x10] sm:$0xff]  ;;  %276 = vmatprep.mubr.msk.f32.mxu0 %vm329_vm0, %v328_v0  ;;  %v24_v3 = vld [vmem:[%s479_s1 + $0x8] sm:$0xff] }
   0x2   :  { %269 = vmatpush3.msra.mxu0 %v26_v1  ;;  %285 = vmatprep.subr.mxu1 %v328_v0  ;;  %v142_v4 = vld [vmem:[%s480_s3 + $0x78] sm:$0xff]  ;;  %v141_v5 = vld [vmem:[%s480_s3 + $0x70] sm:$0xff]  ;;  %v23_v6 = vld [vmem:[%s479_s1] sm:$0xff] }
   0x3   :  { %270 = vmatprep.subr.mxu0 %v328_v0  ;;  %317 = vmatprep.mubr.msk.f32.mxu1 %vm329_vm0, %v328_v0  ;;  %v140_v7 = vld [vmem:[%s480_s3 + $0x68] sm:$0xff]  ;;  %v20_v8 = vld [vmem:[%s481_s0] sm:$0xff]  ;;  %v138_v10 = vld [vmem:[%s480_s3 + $0x58] sm:$0xff] }
   0x4   :  { %271 = vmatpush3.msra.mxu0 %v25_v2  ;;  %286 = vmatpush3.msra.mxu1 %v142_v4  ;;  %v139_v9 = vld [vmem:[%s480_s3 + $0x60] sm:$0xff]  ;;  %v21_v11 = vld [vmem:[%s481_s0 + $0x8] sm:$0xff]  ;;  %v137_v12 = vld [vmem:[%s480_s3 + $0x50] sm:$0xff] }
   0x5   :  { %272 = vmatprep.subr.mxu0 %v328_v0  ;;  %287 = vmatprep.subr.mxu1 %v328_v0  ;;  %v136_v13 = vld [vmem:[%s480_s3 + $0x48] sm:$0xff]  ;;  %v22_v14 = vld [vmem:[%s481_s0 + $0x10] sm:$0xff]  ;;  %v135_v15 = vld [vmem:[%s480_s3 + $0x40] sm:$0xff] }
   0x6   :  { %273 = vmatpush3.msra.mxu0 %v24_v3  ;;  %288 = vmatpush3.msra.mxu1 %v141_v5  ;;  %v134_v16 = vld [vmem:[%s480_s3 + $0x38] sm:$0xff]  ;;  %v133_v17 = vld [vmem:[%s480_s3 + $0x30] sm:$0xff]  ;;  %v132_v18 = vld [vmem:[%s480_s3 + $0x28] sm:$0xff] }
   0x7   :  { %274 = vmatprep.subr.mxu0 %v328_v0  ;;  %289 = vmatprep.subr.mxu1 %v328_v0  ;;  %v131_v19 = vld [vmem:[%s480_s3 + $0x20] sm:$0xff]  ;;  %v130_v20 = vld [vmem:[%s480_s3 + $0x18] sm:$0xff]  ;;  %v129_v21 = vld [vmem:[%s480_s3 + $0x10] sm:$0xff] }
   0x8   :  { %275 = vmatpush3.msra.mxu0 %v23_v6  ;;  %290 = vmatpush3.msra.mxu1 %v140_v7  ;;  %v128_v22 = vld [vmem:[%s480_s3 + $0x8] sm:$0xff]  ;;  %v127_v23 = vld [vmem:[%s480_s3] sm:$0xff] }
   0x9   :  { %277 = vmatmul.mubr.msk.f32.vlgmr.msra.gmra.mxu0 %vm34_vm1, %v20_v8  ;;  %291 = vmatprep.subr.mxu1 %v328_v0  ;;  %v237_v24 = vld [vmem:[%s482_s2] ss:$0 sm:$0xff] }
   0xa   :  { %279 = vmatprep.mubr.msk.f32.mxu0 %vm329_vm0, %v328_v0  ;;  %292 = vmatpush3.msra.mxu1 %v139_v9  ;;  %v241_v37 = vld [vmem:[%s483_s4] ss:$0 sm:$0xff] }
   0xb   :  { %293 = vmatprep.subr.mxu1 %v328_v0 }
   0xc   :  { %294 = vmatpush3.msra.mxu1 %v138_v10 }
   0xd   :  { %280 = vmatmul.mubr.msk.f32.gmra.mxu0 %vm34_vm1, %v21_v11  ;;  %295 = vmatprep.subr.mxu1 %v328_v0 }
   0xe   :  { %282 = vmatprep.mubr.msk.f32.mxu0 %vm329_vm0, %v328_v0  ;;  %296 = vmatpush3.msra.mxu1 %v137_v12 }
   0xf   :  { %297 = vmatprep.subr.mxu1 %v328_v0 }
  0x10   :  { %298 = vmatpush3.msra.mxu1 %v136_v13 }
  0x11   :  { %283 = vmatmul.mubr.msk.f32.gmra.mxu0 %vm34_vm1, %v22_v14  ;;  %299 = vmatprep.subr.mxu1 %v328_v0 }
  0x12   :  { %300 = vmatpush3.msra.mxu1 %v135_v15 }
  0x13   :  { %301 = vmatprep.subr.mxu1 %v328_v0 }
  0x14   :  { %302 = vmatpush3.msra.mxu1 %v134_v16 }
  0x15   :  { %303 = vmatprep.subr.mxu1 %v328_v0 }
  0x16   :  { %304 = vmatpush3.msra.mxu1 %v133_v17 }
  0x17   :  { %305 = vmatprep.subr.mxu1 %v328_v0 }
  0x18   :  { %306 = vmatpush3.msra.mxu1 %v132_v18 }
  0x19   :  { %307 = vmatprep.subr.mxu1 %v328_v0 }
  0x1a   :  { %308 = vmatpush3.msra.mxu1 %v131_v19 }
  0x1b   :  { %309 = vmatprep.subr.mxu1 %v328_v0 }
  0x1c   :  { %310 = vmatpush3.msra.mxu1 %v130_v20 }
  0x1d   :  { %311 = vmatprep.subr.mxu1 %v328_v0 }
  0x1e   :  { %312 = vmatpush3.msra.mxu1 %v129_v21 }
  0x1f   :  { %313 = vmatprep.subr.mxu1 %v328_v0 }
  0x20   :  { %314 = vmatpush3.msra.mxu1 %v128_v22 }
  0x21   :  { %315 = vmatprep.subr.mxu1 %v328_v0 }
  0x22   :  { %316 = vmatpush3.msra.mxu1 %v127_v23 }
  0xc9   :  { %v110_v25 = vpop.f32.mrf.mxu0 }
  0xca   :  { %v111_v26 = vadd.f32 %v237_v24, %v110_v25 }
  0xcb   :  { %v278_v27 = vpop.f32.mrf.mxu0 }
  0xcc   :  { %v124_v28 = vmax.f32 %v111_v26, 0.0 }
  0xcd   :  { %v115_v29 = vpop.f32.mrf.mxu0 }
  0xce   :  { %v116_v30 = vadd.f32 %v237_v24, %v115_v29  ;;  %318 = vmatmul.mubr.f32.vlgmr.msra.gmra.mxu1 %v124_v28 }
  0xcf   :  { %v281_v31 = vpop.f32.mrf.mxu0  ;;  %320 = vmatprep.mubr.msk.f32.mxu1 %vm329_vm0, %v328_v0 }
  0xd0   :  { %v125_v32 = vmax.f32 %v116_v30, 0.0 }
  0xd1   :  { %v120_v33 = vpop.f32.mrf.mxu0 }
  0xd2   :  { %v121_v34 = vadd.f32 %v237_v24, %v120_v33  ;;  %321 = vmatmul.mubr.f32.gmra.mxu1 %v125_v32 }
  0xd3   :  { %v284_v35 = vpop.f32.mrf.mxu0  ;;  %323 = vmatprep.mubr.msk.f32.mxu1 %vm329_vm0, %v328_v0 }
  0xd4   :  { %v126_v36 = vmax.f32 %v121_v34, 0.0 }
  0xd6   :  { %324 = vmatmul.mubr.f32.gmra.mxu1 %v126_v36 }
 0x18e   :  { %v216_v38 = vpop.f32.mrf.mxu1 }
 0x18f   :  { %v217_v39 = vadd.f32 %v241_v37, %v216_v38 }
 0x190   :  { %v319_v40 = vpop.f32.mrf.mxu1 }
 0x191   :  { %230 = vst [vmem:[%s484_s5] sm:$0xff] %v217_v39 }
 0x192   :  { %v221_v41 = vpop.f32.mrf.mxu1 }
 0x193   :  { %v222_v42 = vadd.f32 %v241_v37, %v221_v41 }
 0x194   :  { %v322_v43 = vpop.f32.mrf.mxu1 }
 0x195   :  { %231 = vst [vmem:[%s484_s5 + $0x8] sm:$0xff] %v222_v42 }
 0x196   :  { %v226_v44 = vpop.f32.mrf.mxu1 }
 0x197   :  { %v227_v45 = vadd.f32 %v241_v37, %v226_v44 }
 0x198   :  { %v325_v46 = vpop.f32.mrf.mxu1 }
 0x199   :  { %232 = vst [vmem:[%s484_s5 + $0x10] sm:$0xff] %v227_v45 }

</bundles_post_ra>
